<compile_context>
chip_gen: v6e
topology: v6e:2x2x1
jax: 0.10.0
libtpu: 0.0.40
codegen_flags: <defaults>
</compile_context>

<pallas_src>
import math

import jax
import jax.numpy as jnp
from jax.experimental import pallas as pl
from jax.experimental.pallas import tpu as pltpu


def delta_l(l, lamb):
    return math.log(lamb / l + 1)


def gcn_kernel(scal_ref, x_ref, xl1_ref, x0_ref, weff_ref, att_ref, e_ref,
               bias_ref, out_ref):
    """Single-shot GCN layer.

    scal_ref : SMEM (3,)        -> [zeta, eta, theta]
    x_ref    : VMEM (N, Fin)
    xl1_ref  : VMEM (N, Fin)
    x0_ref   : VMEM (N, Fin)
    weff_ref : VMEM (Fin, Cout)    fused g_l weight
    att_ref  : VMEM (N, N)
    e_ref    : VMEM (K*N, N)       channel-major, pre-flattened edge filter
    bias_ref : VMEM (1, K*Cout)
    out_ref  : VMEM (N, K*Cout)
    """
    KN, N = e_ref.shape
    K = KN // N

    zeta = scal_ref[0]
    eta = scal_ref[1]
    theta = scal_ref[2]

    # Fused g_l projections.  g_l is linear in x, so
    #   eta*g_l(X_l1) + theta*g_l(X_0) == g_l(eta*X_l1 + theta*X_0)
    # and zeta*(A @ g_l(X)) == A @ (zeta*g_l(X)).  Two small MXU passes total.
    s0z = zeta * jnp.dot(x_ref[...], weff_ref[...],
                         preferred_element_type=jnp.float32)         # (N, Cout)
    base = jnp.dot(eta * xl1_ref[...] + theta * x0_ref[...], weff_ref[...],
                   preferred_element_type=jnp.float32)               # (N, Cout)

    # Masked adjacency for all K channels as one 2-D lane/sublane-dense slab
    # (attention replicated along sublanes), then one tall MXU pass:
    # (K*N, N) @ (N, Cout) -> (K*N, Cout).
    att = att_ref[...]
    a = jnp.concatenate([att] * K, axis=0) * e_ref[...]              # (K*N, N)
    # TODO(synk): on v6e/v7x cast `a` / `s0z` to bf16 at the dot inputs (keep
    # f32 accumulate); kept f32 here to preserve reference-exact numerics.
    sup = jnp.dot(a, s0z, preferred_element_type=jnp.float32)        # (K*N, Cout)

    # Lane-dense (N, K*Cout) output; column block k = channel k
    # (== torch out_tensor.transpose(2, 1).reshape(-1, K*Cout)).
    out_ref[...] = jnp.concatenate(
        [sup[k * N:(k + 1) * N, :] + base for k in range(K)], axis=1
    ) + bias_ref[...]


def precompute_gcn_constants(E, weight, num_layer, lamb=0.5):
    """Per-layer constants.  E is layer-invariant and W_eff depends only on
    (weight, num_layer) -- cache the results across forward calls."""
    N = E.shape[0]
    K = E.shape[2]
    Fin, Cout = weight.shape
    d = delta_l(num_layer, lamb)
    eye = jnp.eye(Fin, Cout, dtype=jnp.float32)
    w_eff = (1.0 - d) * eye + d * weight.astype(jnp.float32)         # fused g_l
    # Channel-major, 2-D flattened edge filter: row block k == E[:, :, k].
    e_flat = jnp.transpose(E, (2, 0, 1)).reshape(K * N, N).astype(jnp.float32)
    return e_flat, w_eff


def gcn_layer_forward(X, e_flat, X_0, X_l1, attention,
                      w_eff, zeta, eta, theta, bias):
    N, Fin = X.shape
    KN = e_flat.shape[0]
    K = KN // N
    Cout = w_eff.shape[1]

    scalars = jnp.concatenate([zeta, eta, theta]).astype(jnp.float32)   # (3,)
    bias_row = bias.reshape(1, K * Cout).astype(jnp.float32)

    flops = (2 * N * Fin * Cout          # s0
             + 2 * N * Fin * Cout        # base
             + 2 * KN * N * Cout         # adjacency matmul
             + 2 * KN * N                # mask multiply (+concat)
             + 2 * N * K * Cout)         # epilogue adds
    bytes_accessed = 4 * (3 + 3 * N * Fin + Fin * Cout + N * N
                          + KN * N + K * Cout + N * K * Cout)

    smem = pl.BlockSpec(memory_space=pltpu.MemorySpace.SMEM)
    vmem = pl.BlockSpec(memory_space=pltpu.MemorySpace.VMEM)

    out = pl.pallas_call(
        gcn_kernel,
        out_shape=jax.ShapeDtypeStruct((N, K * Cout), jnp.float32),
        in_specs=[smem, vmem, vmem, vmem, vmem, vmem, vmem, vmem],
        out_specs=vmem,
        cost_estimate=pl.CostEstimate(flops=flops, transcendentals=0,
                                      bytes_accessed=bytes_accessed),
    )(scalars, X.astype(jnp.float32), X_l1.astype(jnp.float32),
      X_0.astype(jnp.float32), w_eff, attention.astype(jnp.float32),
      e_flat, bias_row)
    return out


def gcn_layer_reference(X, E, X_0, X_l1, attention,
                        weight, zeta, eta, theta, bias,
                        num_layer, lamb=0.5):
    """Pure-JAX re-statement of the torch forward, for verification."""
    N, Fin = X.shape
    K = E.shape[2]
    Cout = weight.shape[1]
    d = delta_l(num_layer, lamb)
    eye = jnp.eye(Fin, Cout, dtype=jnp.float32)

    def g(x):
        return (1.0 - d) * (x @ eye) + d * (x @ weight)

    s0, s1, s2 = g(X), g(X_l1), g(X_0)
    outs = []
    for k in range(K):
        support = (attention * E[:, :, k]) @ s0
        outs.append(zeta * support + eta * s1 + theta * s2)
    out_tensor = jnp.stack(outs, axis=2)                     # (N, Cout, K)
    output = jnp.transpose(out_tensor, (0, 2, 1)).reshape(-1, K * Cout)
    return output + bias


if __name__ == "__main__":
    # Small, deterministic problem.
    N = 16            # number of nodes
    input_dim = 32    # node feature dim
    channel_dim = 8   # per-channel output dim
    edgef_dim = 4     # number of edge-feature channels (K)
    num_layer = 2
    output_dim = edgef_dim * channel_dim

    key = jax.random.PRNGKey(0)
    kw, kz, ke, kt, kx, kx0, kxl1, kE, katt = jax.random.split(key, 9)

    # Parameters (deterministic, matching the torch init scheme).
    bound = math.sqrt(6.0 / (input_dim + channel_dim))       # xavier_uniform_
    weight = jax.random.uniform(kw, (input_dim, channel_dim),
                                minval=-bound, maxval=bound, dtype=jnp.float32)
    zeta = jax.random.uniform(kz, (1,), dtype=jnp.float32)   # uniform_() in [0,1)
    eta = jax.random.uniform(ke, (1,), dtype=jnp.float32)
    theta = jax.random.uniform(kt, (1,), dtype=jnp.float32)
    bias = jnp.zeros((output_dim,), dtype=jnp.float32)       # zeros_

    # Inputs.
    X = jax.random.normal(kx, (N, input_dim), dtype=jnp.float32)
    X_0 = jax.random.normal(kx0, (N, input_dim), dtype=jnp.float32)
    X_l1 = jax.random.normal(kxl1, (N, input_dim), dtype=jnp.float32)
    E = jax.random.uniform(kE, (N, N, edgef_dim), dtype=jnp.float32)
    attention = jax.random.uniform(katt, (N, N), dtype=jnp.float32)

    # One-time, cacheable prep (E is layer-invariant; W_eff is per-layer-const).
    e_flat, w_eff = precompute_gcn_constants(E, weight, num_layer)

    out = gcn_layer_forward(X, e_flat, X_0, X_l1, attention,
                            w_eff, zeta, eta, theta, bias)
    out = jax.block_until_ready(out)

    ref = gcn_layer_reference(X, E, X_0, X_l1, attention,
                              weight, zeta, eta, theta, bias, num_layer)

    assert out.shape == (N, output_dim), out.shape
    assert jnp.allclose(out, ref, atol=1e-4, rtol=1e-4), \
        float(jnp.max(jnp.abs(out - ref)))
    print("KERNEL_OK")
</pallas_src>

<mosaic_0001>
module attributes {stable_mosaic.version = 11 : i64} {
  func.func @gcn_kernel(%arg0: memref<3xf32, #tpu.memory_space<smem>>, %arg1: memref<16x32xf32, #tpu.memory_space<vmem>>, %arg2: memref<16x32xf32, #tpu.memory_space<vmem>>, %arg3: memref<16x32xf32, #tpu.memory_space<vmem>>, %arg4: memref<32x8xf32, #tpu.memory_space<vmem>>, %arg5: memref<16x16xf32, #tpu.memory_space<vmem>>, %arg6: memref<64x16xf32, #tpu.memory_space<vmem>>, %arg7: memref<1x32xf32, #tpu.memory_space<vmem>>, %arg8: memref<16x32xf32, #tpu.memory_space<vmem>>) attributes {dimension_semantics = [], scalar_prefetch = 0 : i64, scratch_operands = 0 : i64, tpu.core_type = #tpu.core_type<tc>} {
    %c0 = arith.constant 0 : index
    %0 = memref.load %arg0[%c0] : memref<3xf32, #tpu.memory_space<smem>>
    %c1 = arith.constant 1 : index
    %1 = memref.load %arg0[%c1] : memref<3xf32, #tpu.memory_space<smem>>
    %c2 = arith.constant 2 : index
    %2 = memref.load %arg0[%c2] : memref<3xf32, #tpu.memory_space<smem>>
    %c0_0 = arith.constant 0 : index
    %c0_1 = arith.constant 0 : index
    %3 = vector.load %arg1[%c0_0, %c0_1] : memref<16x32xf32, #tpu.memory_space<vmem>>, vector<16x32xf32>
    %c0_2 = arith.constant 0 : index
    %c0_3 = arith.constant 0 : index
    %4 = vector.load %arg4[%c0_2, %c0_3] : memref<32x8xf32, #tpu.memory_space<vmem>>, vector<32x8xf32>
    %cst = arith.constant dense<0.000000e+00> : vector<16x8xf32>
    %5 = tpu.matmul %3, %4, %cst {dimension_numbers = #tpu.dot_dimension_numbers<[1], [0], [0], [1], [0, 0, 1, 1], [], []>} : vector<16x32xf32>, vector<32x8xf32>, vector<16x8xf32> -> vector<16x8xf32>
    %6 = vector.broadcast %0 : f32 to vector<16x8xf32>
    %7 = arith.mulf %6, %5 : vector<16x8xf32>
    %c0_4 = arith.constant 0 : index
    %c0_5 = arith.constant 0 : index
    %8 = vector.load %arg2[%c0_4, %c0_5] : memref<16x32xf32, #tpu.memory_space<vmem>>, vector<16x32xf32>
    %9 = vector.broadcast %1 : f32 to vector<16x32xf32>
    %10 = arith.mulf %9, %8 : vector<16x32xf32>
    %c0_6 = arith.constant 0 : index
    %c0_7 = arith.constant 0 : index
    %11 = vector.load %arg3[%c0_6, %c0_7] : memref<16x32xf32, #tpu.memory_space<vmem>>, vector<16x32xf32>
    %12 = vector.broadcast %2 : f32 to vector<16x32xf32>
    %13 = arith.mulf %12, %11 : vector<16x32xf32>
    %14 = arith.addf %10, %13 : vector<16x32xf32>
    %c0_8 = arith.constant 0 : index
    %c0_9 = arith.constant 0 : index
    %15 = vector.load %arg4[%c0_8, %c0_9] : memref<32x8xf32, #tpu.memory_space<vmem>>, vector<32x8xf32>
    %cst_10 = arith.constant dense<0.000000e+00> : vector<16x8xf32>
    %16 = tpu.matmul %14, %15, %cst_10 {dimension_numbers = #tpu.dot_dimension_numbers<[1], [0], [0], [1], [0, 0, 1, 1], [], []>} : vector<16x32xf32>, vector<32x8xf32>, vector<16x8xf32> -> vector<16x8xf32>
    %c0_11 = arith.constant 0 : index
    %c0_12 = arith.constant 0 : index
    %17 = vector.load %arg5[%c0_11, %c0_12] : memref<16x16xf32, #tpu.memory_space<vmem>>, vector<16x16xf32>
    %18 = tpu.concatenate %17, %17, %17, %17 in 0 : vector<16x16xf32>, vector<16x16xf32>, vector<16x16xf32>, vector<16x16xf32> -> vector<64x16xf32>
    %c0_13 = arith.constant 0 : index
    %c0_14 = arith.constant 0 : index
    %19 = vector.load %arg6[%c0_13, %c0_14] : memref<64x16xf32, #tpu.memory_space<vmem>>, vector<64x16xf32>
    %20 = arith.mulf %18, %19 : vector<64x16xf32>
    %cst_15 = arith.constant dense<0.000000e+00> : vector<64x8xf32>
    %21 = tpu.matmul %20, %7, %cst_15 {dimension_numbers = #tpu.dot_dimension_numbers<[1], [0], [0], [1], [0, 0, 1, 1], [], []>} : vector<64x16xf32>, vector<16x8xf32>, vector<64x8xf32> -> vector<64x8xf32>
    %22 = vector.extract_strided_slice %21 {offsets = [0, 0], sizes = [16, 8], strides = [1, 1]} : vector<64x8xf32> to vector<16x8xf32>
    %23 = arith.addf %22, %16 : vector<16x8xf32>
    %24 = vector.extract_strided_slice %21 {offsets = [16, 0], sizes = [16, 8], strides = [1, 1]} : vector<64x8xf32> to vector<16x8xf32>
    %25 = arith.addf %24, %16 : vector<16x8xf32>
    %26 = vector.extract_strided_slice %21 {offsets = [32, 0], sizes = [16, 8], strides = [1, 1]} : vector<64x8xf32> to vector<16x8xf32>
    %27 = arith.addf %26, %16 : vector<16x8xf32>
    %28 = vector.extract_strided_slice %21 {offsets = [48, 0], sizes = [16, 8], strides = [1, 1]} : vector<64x8xf32> to vector<16x8xf32>
    %29 = arith.addf %28, %16 : vector<16x8xf32>
    %30 = tpu.concatenate %23, %25, %27, %29 in 1 : vector<16x8xf32>, vector<16x8xf32>, vector<16x8xf32>, vector<16x8xf32> -> vector<16x32xf32>
    %c0_16 = arith.constant 0 : index
    %c0_17 = arith.constant 0 : index
    %31 = vector.load %arg7[%c0_16, %c0_17] : memref<1x32xf32, #tpu.memory_space<vmem>>, vector<1x32xf32>
    %32 = vector.broadcast %31 : vector<1x32xf32> to vector<16x32xf32>
    %33 = arith.addf %30, %32 : vector<16x32xf32>
    %c0_18 = arith.constant 0 : index
    %c0_19 = arith.constant 0 : index
    %34 = vector.load %arg8[%c0_18, %c0_19] : memref<16x32xf32, #tpu.memory_space<vmem>>, vector<16x32xf32>
    tpu.vector_store %arg8[%c0_18, %c0_19], %33 {strides = array<i32>} : memref<16x32xf32, #tpu.memory_space<vmem>>, vector<16x32xf32>,
    return
  }
}

</mosaic_0001>

<bundles_post_ra>
// kernel: tpu_custom_call.1
= control target key start
LH: loop header
LB: loop body
LE: loop exit
PB: predicated region body
PF: predicated region fallthrough
CT: control target
= control target key end

     0   :  { %13 = vsyncpa [#allocation4], 0  ;;  %s702_s0 = inlined_call_operand.vmem [shape: f32[3], index: 0, kind: input, shape index: {}]   ;;  %s703_s1 = inlined_call_operand.vmem [shape: f32[16,32], index: 1, kind: input, shape index: {}]   ;;  %s704_s2 = inlined_call_operand.vmem [shape: f32[16,32], index: 2, kind: input, shape index: {}]   ;;  %s705_s3 = inlined_call_operand.vmem [shape: f32[16,32], index: 3, kind: input, shape index: {}]   ;;  %s706_s4 = inlined_call_operand.vmem [shape: f32[32,8], index: 4, kind: input, shape index: {}]   ;;  %s707_s5 = inlined_call_operand.vmem [shape: f32[16,16], index: 5, kind: input, shape index: {}]   ;;  %s708_s6 = inlined_call_operand.vmem [shape: f32[64,16], index: 6, kind: input, shape index: {}]   ;;  %s709_s7 = inlined_call_operand.vmem [shape: f32[1,32], index: 7, kind: input, shape index: {}]   ;;  %s710_s8 = inlined_call_operand.hbm [shape: f32[16,32], index: 8, kind: output, shape index: {}]  }
   0x1   :  { %14 = vsyncpa [#allocation3], 0  ;;  %s21_s29 = sshll.u32 %s702_s0, 4  ;;  %s22_s29 = int_to_ptr.vmem [resolvable:$true] %s21_s29 }
   0x2   :  { %s527_s30 = scalar_lea.vmem %s22_s29, 16  ;;  %p532_p1 = scmp.lt.s32.totalorder %s22_s29, %s22_s29 }
   0x3   :  { %p528_p0 = scmp.ne.s32.totalorder %s22_s29, %s527_s30  ;;  %p533_p2 = scmp.lt.s32.totalorder %s527_s30, %s527_s30 }
   0x5   :  { %p534_p3 = por %p533_p2, %p532_p1 }
   0x7   :  { %p535_p4 = pnand %p534_p3, %p528_p0 }
   0x9   :  { %538 = shalt.err (!%p535_p4)
}
   0xa   :  { %s563_s9 = smov [#allocation2]  }
   0xb   :  { %24 = dma.vmem_to_smem %s22_s29, 16, %s563_s9, [#allocation4]  }
   0xc   :  { %559 = dma.done.wait [#allocation4], 16  }
   0xd   :  { %560 = vsyncadd [#allocation4], 4294967280 }
   0xe   :  { %42 = sfence }
   0xf   :  { %v51_v0 = vld [vmem:[%s706_s4 + $0x18] sm:$0xff]  ;;  %v50_v1 = vld [vmem:[%s706_s4 + $0x10] sm:$0xff]  ;;  %vm52_vm0 = vcmask 261120   ;;  %v46_v2 = vld [vmem:[%s703_s1] sm:$0xff]  ;;  %s446_s21 = sld [smem:[#allocation2 + $0x1]]  ;;  %vm248_vm1 = vcmask 130048  }
  0x10   :  { %483 = vmatprep.subr.mxu1 %v51_v0  ;;  %v49_v3 = vld [vmem:[%s706_s4 + $0x8] sm:$0xff]  ;;  %491 = vmatprep.mubr.msk.f32.mxu1 %vm52_vm0, %v46_v2  ;;  %v48_v4 = vld [vmem:[%s706_s4] sm:$0xff]  ;;  %s447_s4 = sld [smem:[#allocation2 + $0x2]]  ;;  %v234_v26 = vld [vmem:[%s708_s6 + $0x10] sm:$0xff]  ;;  %s564_s23 = smov 8   ;;  %vm410_vm2 = vcmask 64512  }
  0x11   :  { %484 = vmatpush3.msra.mxu1 %v51_v0  ;;  %v47_v5 = vld [vmem:[%s703_s1 + $0x8] sm:$0xff]  ;;  %v137_v6 = vld [vmem:[%s704_s2] sm:$0xff]  ;;  %v235_v31 = vld [vmem:[%s708_s6 + $0x18] sm:$0xff]  ;;  %s566_s1 = smov 24   ;;  %vm415_vm3 = vcmask 195584   ;;  %s567_s26 = smov [#allocation5]  }
  0x12   :  { %485 = vmatprep.subr.mxu1 %v50_v1  ;;  %v142_v8 = vld [vmem:[%s705_s3] sm:$0xff]  ;;  %v138_v9 = vld [vmem:[%s704_s2 + $0x8] sm:$0xff]  ;;  %s43_s2 = sld [smem:[#allocation2]]  ;;  %v238_v36 = vld [vmem:[%s708_s6 + $0x30] sm:$0xff]  ;;  %s434_s27 = sshll.u32 %s567_s26, 4  ;;  %s435_s27 = int_to_ptr.vmem [resolvable:$true] %s434_s27 }
  0x13   :  { %486 = vmatpush3.msra.mxu1 %v50_v1  ;;  %v143_v11 = vld [vmem:[%s705_s3 + $0x8] sm:$0xff]  ;;  %v230_v16 = vld [vmem:[%s707_s5] sm:$0xff]  ;;  %v239_v39 = vld [vmem:[%s708_s6 + $0x38] sm:$0xff]  ;;  %s539_s28 = scalar_lea.vmem %s435_s27, 256  ;;  %p544_p6 = scmp.lt.s32.totalorder %s435_s27, %s435_s27 }
  0x14   :  { %487 = vmatprep.subr.mxu1 %v49_v3  ;;  %v232_v17 = vld [vmem:[%s708_s6] sm:$0xff]  ;;  %v231_v23 = vld [vmem:[%s707_s5 + $0x8] sm:$0xff]  ;;  %v242_v30 = vmul.f32 %v234_v26, %v230_v16  ;;  %v246_v38 = vmul.f32 %v238_v36, %v230_v16  ;;  %p540_p5 = scmp.ne.s32.totalorder %s435_s27, %s539_s28  ;;  %p545_p7 = scmp.lt.s32.totalorder %s539_s28, %s539_s28 }
  0x15   :  { %488 = vmatpush3.msra.mxu1 %v49_v3  ;;  %v139_v7 = vstv %s446_s21  ;;  %v240_v18 = vmul.f32 %v232_v17, %v230_v16  ;;  %v233_v24 = vld [vmem:[%s708_s6 + $0x8] sm:$0xff]  ;;  %v236_v32 = vld [vmem:[%s708_s6 + $0x20] sm:$0xff]  ;;  %v243_v33 = vmul.f32 %v235_v31, %v231_v23  ;;  %v247_v40 = vmul.f32 %v239_v39, %v231_v23 }
  0x16   :  { %489 = vmatprep.subr.mxu1 %v48_v4  ;;  %v140_v10 = vmul.f32 %v139_v7, %v137_v6  ;;  %v144_v12 = vstv %s447_s4  ;;  %v141_v13 = vmul.f32 %v139_v7, %v138_v9  ;;  %v241_v29 = vmul.f32 %v233_v24, %v231_v23  ;;  %v237_v35 = vld [vmem:[%s708_s6 + $0x28] sm:$0xff]  ;;  %s565_s6 = smov 16   ;;  %p546_p8 = por %p545_p7, %p544_p6 }
  0x17   :  { %490 = vmatpush3.msra.mxu1 %v48_v4  ;;  %v145_v14 = vmul.f32 %v144_v12, %v142_v8  ;;  %v146_v15 = vmul.f32 %v144_v12, %v143_v11  ;;  %509 = vmatprep.mubr.msk.f32.mxu0 %vm248_vm1, %v240_v18  ;;  %v244_v34 = vmul.f32 %v236_v32, %v230_v16 }
  0x18   :  { %492 = vmatmul.mubr.msk.f32.vlgmr.msra.gmra.mxu1 %vm52_vm0, %v47_v5  ;;  %494 = vmatprep.subr.mxu1 %v51_v0  ;;  %v134_v21 = vstv %s43_s2  ;;  %v245_v37 = vmul.f32 %v237_v35, %v231_v23  ;;  %p547_p9 = pnand %p546_p8, %p540_p5 }
  0x19   :  { %495 = vmatpush3.msra.mxu1 %v51_v0  ;;  %v147_v19 = vadd.f32 %v145_v14, %v140_v10  ;;  %v148_v20 = vadd.f32 %v146_v15, %v141_v13 }
  0x1a   :  { %496 = vmatprep.subr.mxu1 %v50_v1 }
  0x1b   :  { %497 = vmatpush3.msra.mxu1 %v50_v1  ;;  %502 = vmatprep.mubr.msk.f32.mxu1 %vm52_vm0, %v147_v19  ;;  %v460_v1 = vld [vmem:[%s709_s7] ss:$0 sm:$0xff] }
  0x1c   :  { %498 = vmatprep.subr.mxu1 %v49_v3 }
  0x1d   :  { %499 = vmatpush3.msra.mxu1 %v49_v3 }
  0x1e   :  { %500 = vmatprep.subr.mxu1 %v48_v4 }
  0x1f   :  { %501 = vmatpush3.msra.mxu1 %v48_v4 }
  0x20   :  { %503 = vmatmul.mubr.msk.f32.vlgmr.msra.gmra.mxu1 %vm52_vm0, %v148_v20 }
  0xd8   :  { %v493_v22 = vpop.f32.mrf.mxu1 }
  0xd9   :  { %v136_v25 = vmul.f32 %v493_v22, %v134_v21 }
  0xda   :  { %v125_v27 = vpop.f32.mrf.mxu1 }
  0xdb   :  { %v135_v28 = vmul.f32 %v134_v21, %v125_v27  ;;  %505 = vmatprep.subr.mxu0 %v136_v25 }
  0xdc   :  { %506 = vmatpush3.msra.mxu0 %v136_v25 }
  0xdd   :  { %507 = vmatprep.subr.mxu0 %v135_v28 }
  0xde   :  { %508 = vmatpush3.msra.mxu0 %v135_v28 }
  0xdf   :  { %510 = vmatmul.mubr.msk.f32.vlgmr.msra.gmra.mxu0 %vm248_vm1, %v241_v29 }
  0xe0   :  { %512 = vmatprep.mubr.msk.f32.mxu0 %vm248_vm1, %v242_v30  ;;  %v504_v41 = vpop.f32.mrf.mxu1 }
  0xe2   :  { %v221_v43 = vpop.f32.mrf.mxu1 }
  0xe3   :  { %513 = vmatmul.mubr.msk.f32.gmra.mxu0 %vm248_vm1, %v243_v33 }
  0xe4   :  { %515 = vmatprep.mubr.msk.f32.mxu0 %vm248_vm1, %v244_v34 }
  0xe7   :  { %516 = vmatmul.mubr.msk.f32.gmra.mxu0 %vm248_vm1, %v245_v37 }
  0xe8   :  { %518 = vmatprep.mubr.msk.f32.mxu0 %vm248_vm1, %v246_v38 }
  0xeb   :  { %519 = vmatmul.mubr.msk.f32.gmra.mxu0 %vm248_vm1, %v247_v40 }
 0x19f   :  { %v511_v42 = vpop.f32.mrf.mxu0 }
 0x1a0   :  { %v379_v63 = vadd.f32 %v511_v42, %v504_v41 }
 0x1a1   :  { %v339_v44 = vpop.f32.mrf.mxu0 }
 0x1a2   :  { %v378_v45 = vadd.f32 %v339_v44, %v221_v43 }
 0x1a3   :  { %v514_v46 = vpop.f32.mrf.mxu0 }
 0x1a4   :  { %v381_v47 = vadd.f32 %v514_v46, %v504_v41 }
 0x1a5   :  { %v349_v48 = vpop.f32.mrf.mxu0 }
 0x1a6   :  { %390 = vrot.lane.b32.xlu0 %v381_v47, %s564_s23  ;;  %v380_v50 = vadd.f32 %v349_v48, %v221_v43 }
 0x1a7   :  { %v517_v49 = vpop.f32.mrf.mxu0 }
 0x1a8   :  { %v383_v51 = vadd.f32 %v517_v49, %v504_v41 }
 0x1a9   :  { %v359_v52 = vpop.f32.mrf.mxu0 }
 0x1aa   :  { %388 = vrot.lane.b32.xlu0 %v380_v50, %s564_s23  ;;  %398 = vrot.lane.b32.xlu1 %v383_v51, %s565_s6  ;;  %v382_v54 = vadd.f32 %v359_v52, %v221_v43 }
 0x1ab   :  { %v520_v53 = vpop.f32.mrf.mxu0 }
 0x1ac   :  { %v385_v57 = vadd.f32 %v520_v53, %v504_v41 }
 0x1ad   :  { %v369_v55 = vpop.f32.mrf.mxu0 }
 0x1ae   :  { %v384_v56 = vadd.f32 %v369_v55, %v221_v43  ;;  %396 = vrot.lane.b32.xlu1 %v382_v54, %s565_s6 }
 0x1b0   :  { %404 = vrot.lane.b32.xlu0 %v384_v56, %s566_s1 }
 0x1b2   :  { %406 = vrot.lane.b32.xlu1 %v385_v57, %s566_s1 }
 0x218   :  { %v391_v58 = vpop.permute.xlu0 %390 }
 0x219   :  { %v412_v3 = vsel %vm410_vm2, %v379_v63, %v391_v58 }
 0x21c   :  { %v399_v59 = vpop.permute.xlu1 %398  ;;  %v389_v60 = vpop.permute.xlu0 %388 }
 0x21d   :  { %v411_v61 = vsel %vm410_vm2, %v378_v45, %v389_v60  ;;  %v414_v5 = vsel %vm248_vm1, %v412_v3, %v399_v59 }
 0x220   :  { %v397_v62 = vpop.permute.xlu1 %396 }
 0x221   :  { %v413_v0 = vsel %vm248_vm1, %v411_v61, %v397_v62 }
 0x222   :  { %v405_v2 = vpop.permute.xlu0 %404 }
 0x223   :  { %v416_v4 = vsel %vm415_vm3, %v413_v0, %v405_v2 }
 0x224   :  { %v425_v6 = vadd.f32 %v460_v1, %v416_v4  ;;  %v407_v7 = vpop.permute.xlu1 %406 }
 0x225   :  { %v417_v8 = vsel %vm415_vm3, %v414_v5, %v407_v7 }
 0x226   :  { %427 = vst.msk [vmem:[#allocation5] sm:$0xff] %vm52_vm0, %v425_v6  ;;  %v426_v9 = vadd.f32 %v460_v1, %v417_v8 }
 0x228   :  { %428 = vst.msk [vmem:[#allocation5 + $0x8] sm:$0xff] %vm52_vm0, %v426_v9 }
 0x229   :  { %550 = shalt.err (!%p547_p9)
}
 0x22a   :  { %s568_s7 = smov 128  }
 0x22b   :  { %440 = dma.vmem_to_hbm [thread:$0]  %s435_s27, 256, %s710_s8, [#allocation3], %s568_s7, %s568_s7, %s564_s23  }
 0x22c   :  { %561 = dma.done.wait [#allocation3], 256  }
 0x22d   :  { %562 = vsyncadd [#allocation3], 4294967040 }
 0x22e   :  { %444 = vsyncpa [#allocation3], 1 }
 0x22f   :  { %445 = vsyncpa [#allocation4], 1 }

</bundles_post_ra>
